<compile_context>
chip_gen: v7x
topology: tpu7x:2x2x1
jax: 0.10.0
libtpu: 0.0.40
codegen_flags: <defaults>
</compile_context>

<pallas_src>
import jax
import jax.numpy as jnp
from jax.experimental import pallas as pl
from jax.experimental.pallas import tpu as pltpu


def _rfss_kernel(x_ref, svp_ref,
                 w1_ref, b1_ref,
                 w2_ref, b2_ref,
                 w3_ref, b3_ref,
                 wch_ref, wcs_ref, bc_ref,
                 out_ref):
    """All activations are lane-dense: (features, TB) with the batch on lanes."""
    cd = w1_ref.dtype                       # MXU operand dtype (bf16 or f32)

    x = x_ref[...]                          # (TB, in_ch), already cast to cd
    svp = svp_ref[...]                      # (2, TB) f32, VPU only

    # hidden1: (H, TB) via an NT contraction ('hk,nk->hn') so the x tile is
    # consumed in its natural HBM layout while the result comes out lane-dense.
    h1 = jax.lax.dot_general(w1_ref[...], x,
                             dimension_numbers=(((1,), (1,)), ((), ())),
                             preferred_element_type=jnp.float32)
    h1 = jnp.maximum(h1 + b1_ref[...], 0.0)              # bias is (H, 1)

    # hidden2 / hidden3: plain (feat_out, feat_in) @ (feat_in, TB) matmuls.
    h2 = jnp.dot(w2_ref[...], h1.astype(cd),
                 preferred_element_type=jnp.float32)
    h2 = jnp.maximum(h2 + b2_ref[...], 0.0)

    h3 = jnp.dot(w3_ref[...], h2.astype(cd),
                 preferred_element_type=jnp.float32)
    h3 = jnp.maximum(h3 + b3_ref[...], 0.0)

    # hidden_cat over cat([h3, svp], dim=1) as a split contraction:
    #   h3 part -> MXU matmul; svp part (K=2) -> two VPU broadcast-FMAs.
    wcs = wcs_ref[...]                                    # (out_dim, 2) f32
    hc = jnp.dot(wch_ref[...], h3.astype(cd),
                 preferred_element_type=jnp.float32)
    hc = hc + wcs[:, 0:1] * svp[0:1, :] + wcs[:, 1:2] * svp[1:2, :]
    hc = hc + bc_ref[...]
    out_ref[...] = jnp.maximum(hc, 0.0).astype(out_ref.dtype)


def _reference(x, svp, params, compute_dtype=jnp.float32):
    """Pure-JAX reference; emulates the kernel's MXU-operand rounding."""
    (w1, b1, w2, b2, w3, b3, wc, bc) = params
    cd = jnp.dtype(compute_dtype)
    h4 = w3.shape[1]
    c = lambda a: a.astype(cd).astype(jnp.float32)
    relu = lambda v: jnp.maximum(v, 0.0)
    h1 = relu(c(x) @ c(w1) + b1)
    h2 = relu(c(h1) @ c(w2) + b2)
    h3 = relu(c(h2) @ c(w3) + b3)
    hc = c(h3) @ c(wc[:h4]) + svp @ wc[h4:] + bc
    return relu(hc)


def rfss_svp_forward(x, svp, params, *, compute_dtype=jnp.bfloat16,
                     batch_tile=16384, use_pallas=None):
    """x: (B, in_channels) f32; svp: (B, 2) f32. Returns a 1-tuple (out,)."""
    (w1, b1, w2, b2, w3, b3, wc, bc) = params
    B, in_ch = x.shape
    H = w1.shape[1]
    H2 = w2.shape[1]
    h4 = w3.shape[1]              # hidden_channels // 4
    out_dim = wc.shape[1]         # hidden_channels // 8
    cd = jnp.dtype(compute_dtype)

    # ---- small-B fast path: XLA fused dense is faster than kernel launch ----
    if use_pallas is None:
        use_pallas = B >= 2048
    if not use_pallas:
        return (_reference(x, svp, params, compute_dtype),)

    # ---- lane-dense (transposed) weights, biases as (feat, 1) columns -------
    w1t = w1.T.astype(cd)                        # (H,   in_ch)
    w2t = w2.T.astype(cd)                        # (H2,  H)
    w3t = w3.T.astype(cd)                        # (h4,  H2)
    wcht = wc[:h4].T.astype(cd)                  # (out, h4)   MXU part of cat
    wcst = wc[h4:].T.astype(jnp.float32)         # (out, 2)    VPU part of cat
    b1r = b1.reshape(-1, 1).astype(jnp.float32)
    b2r = b2.reshape(-1, 1).astype(jnp.float32)
    b3r = b3.reshape(-1, 1).astype(jnp.float32)
    bcr = bc.reshape(-1, 1).astype(jnp.float32)
    weights = (w1t, b1r, w2t, b2r, w3t, b3r, wcht, wcst, bcr)
    weight_bytes = sum(int(a.size) * a.dtype.itemsize for a in weights)

    # bf16 x halves the only large HBM read (ideally the cast fuses upstream).
    x_in = x.astype(cd)
    # svp is tiny (8 B/row); transpose it once so the kernel's svp FMAs are
    # lane-dense with zero in-kernel layout work.
    svp_t = svp.astype(jnp.float32).T            # (2, B)

    # ---- batch tiling --------------------------------------------------------
    LANE, SUB = 128, 8
    rup = lambda v, m: (v + m - 1) // m * m

    def footprint(tb):            # VMEM bytes for tiles + compiler activations
        io = 2 * (tb * rup(in_ch, LANE) * x_in.dtype.itemsize    # x (lane-padded)
                  + rup(2, SUB) * tb * 4                         # svp_t
                  + rup(out_dim, SUB) * tb * 4)                  # out
        act = (rup(H, SUB) + rup(H2, SUB) + rup(h4, SUB) + rup(out_dim, SUB)) * tb * 4
        return io + act

    VMEM_BUDGET = 40 << 20        # well under v7x's 64 MiB physical VMEM
    TB = rup(max(1, min(int(batch_tile), B)), LANE)
    while TB > LANE and footprint(TB) + 2 * weight_bytes > VMEM_BUDGET:
        TB = rup(max(LANE, TB // 2), LANE)

    n_blocks = pl.cdiv(B, TB)
    # Megacore (v7x): ensure >= 2 "parallel" blocks when there is enough work.
    if n_blocks == 1 and B > 2 * LANE:
        n_blocks = 2
    # Rebalance tile size to minimise padding waste for this block count
    # (never increases TB, so the VMEM budget still holds).
    TB = rup(pl.cdiv(B, n_blocks), LANE)
    n_blocks = pl.cdiv(B, TB)
    B_pad = n_blocks * TB

    if B_pad != B:
        x_in = jnp.pad(x_in, ((0, B_pad - B), (0, 0)))
        svp_t = jnp.pad(svp_t, ((0, 0), (0, B_pad - B)))

    vmem_limit = int(1.25 * (footprint(TB) + 2 * weight_bytes)) + (1 << 20)
    vmem_limit = max(8 << 20, min(vmem_limit, 48 << 20))

    flops = 2 * B_pad * (in_ch * H + H * H2 + H2 * h4 + h4 * out_dim + 2 * out_dim)
    bytes_accessed = (int(x_in.size) * x_in.dtype.itemsize
                      + int(svp_t.size) * 4
                      + B_pad * out_dim * 4
                      + weight_bytes)
    cost = pl.CostEstimate(flops=flops, transcendentals=0,
                           bytes_accessed=bytes_accessed)

    def wspec(a):                 # resident across grid steps (constant index)
        return pl.BlockSpec(a.shape, lambda i: (0, 0))

    out_t = pl.pallas_call(
        _rfss_kernel,
        out_shape=jax.ShapeDtypeStruct((out_dim, B_pad), jnp.float32),
        grid=(n_blocks,),
        in_specs=[
            pl.BlockSpec((TB, in_ch), lambda i: (i, 0)),       # x tile
            pl.BlockSpec((2, TB), lambda i: (0, i)),           # svp_t tile
            *[wspec(a) for a in weights],
        ],
        out_specs=pl.BlockSpec((out_dim, TB), lambda i: (0, i)),  # lane-dense out
        compiler_params=pltpu.CompilerParams(
            dimension_semantics=("parallel",),
            vmem_limit_bytes=vmem_limit),
        cost_estimate=cost,
    )(x_in, svp_t, *weights)

    out = out_t.T                 # tiny (out_dim, B_pad) -> (B_pad, out_dim)
    if B_pad != B:
        out = out[:B]
    return (out,)


def init_params(key, in_channels, hidden_channels):
    """Deterministic init matching nn.Linear shapes (weights stored as (in, out))."""
    h, h2, h4, h8 = (hidden_channels, hidden_channels // 2,
                     hidden_channels // 4, hidden_channels // 8)
    ks = jax.random.split(key, 8)

    def lin(kw, kb, fan_in, fan_out):
        bound = 1.0 / jnp.sqrt(fan_in)
        w = jax.random.uniform(kw, (fan_in, fan_out), jnp.float32, -bound, bound)
        b = jax.random.uniform(kb, (fan_out,), jnp.float32, -bound, bound)
        return w, b

    w1, b1 = lin(ks[0], ks[1], in_channels, h)
    w2, b2 = lin(ks[2], ks[3], h, h2)
    w3, b3 = lin(ks[4], ks[5], h2, h4)
    wc, bc = lin(ks[6], ks[7], h4 + 2, h8)
    return (w1, b1, w2, b2, w3, b3, wc, bc)


if __name__ == "__main__":
    in_channels, hidden_channels = 16, 32
    key = jax.random.PRNGKey(0)
    kx, ks, kp, kx2, ks2 = jax.random.split(key, 5)
    params = init_params(kp, in_channels, hidden_channels)

    # ---- small batch, Pallas forced (single block, padded to 128 rows) ------
    B = 8
    x = jax.random.normal(kx, (B, in_channels), jnp.float32)
    svp = jax.random.normal(ks, (B, 2), jnp.float32)

    (out_f32,) = rfss_svp_forward(x, svp, params, compute_dtype=jnp.float32,
                                  use_pallas=True)
    out_f32 = jax.block_until_ready(out_f32)
    ref_f32 = _reference(x, svp, params, jnp.float32)
    assert out_f32.shape == (B, hidden_channels // 8)
    assert jnp.allclose(out_f32, ref_f32, atol=1e-5, rtol=1e-5), "f32 mismatch"

    # bf16 MXU operands (new default on all generations), f32 accumulation.
    (out_bf16,) = rfss_svp_forward(x, svp, params, use_pallas=True)
    out_bf16 = jax.block_until_ready(out_bf16)
    ref_bf16 = _reference(x, svp, params, jnp.bfloat16)
    assert jnp.allclose(out_bf16, ref_bf16, atol=2e-3, rtol=2e-3), "bf16 mismatch"
    assert jnp.allclose(out_bf16, ref_f32, atol=5e-2, rtol=5e-2), "bf16 drift too large"

    # ---- small batch, auto path (skips Pallas; XLA fused dense) --------------
    (out_auto,) = rfss_svp_forward(x, svp, params, compute_dtype=jnp.float32)
    out_auto = jax.block_until_ready(out_auto)
    assert jnp.allclose(out_auto, ref_f32, atol=1e-5, rtol=1e-5), "fast-path mismatch"

    # ---- larger batch: 2 grid blocks + batch padding (megacore-style split) --
    B2 = 300
    x2 = jax.random.normal(kx2, (B2, in_channels), jnp.float32)
    svp2 = jax.random.normal(ks2, (B2, 2), jnp.float32)
    (out2,) = rfss_svp_forward(x2, svp2, params, use_pallas=True)
    out2 = jax.block_until_ready(out2)
    ref2 = _reference(x2, svp2, params, jnp.bfloat16)
    assert out2.shape == (B2, hidden_channels // 8)
    assert jnp.allclose(out2, ref2, atol=2e-3, rtol=2e-3), "large-B bf16 mismatch"

    print("KERNEL_OK")
</pallas_src>

<mosaic_0001>
module attributes {stable_mosaic.version = 11 : i64} {
  func.func @_rfss_kernel(%arg0: i32, %arg1: memref<128x16xf32, #tpu.memory_space<vmem>>, %arg2: memref<2x128xf32, #tpu.memory_space<vmem>>, %arg3: memref<32x16xf32, #tpu.memory_space<vmem>>, %arg4: memref<32x1xf32, #tpu.memory_space<vmem>>, %arg5: memref<16x32xf32, #tpu.memory_space<vmem>>, %arg6: memref<16x1xf32, #tpu.memory_space<vmem>>, %arg7: memref<8x16xf32, #tpu.memory_space<vmem>>, %arg8: memref<8x1xf32, #tpu.memory_space<vmem>>, %arg9: memref<4x8xf32, #tpu.memory_space<vmem>>, %arg10: memref<4x2xf32, #tpu.memory_space<vmem>>, %arg11: memref<4x1xf32, #tpu.memory_space<vmem>>, %arg12: memref<4x128xf32, #tpu.memory_space<vmem>>) attributes {dimension_semantics = [#tpu.dimension_semantics<parallel>], iteration_bounds = array<i64: 1>, scalar_prefetch = 0 : i64, scratch_operands = 0 : i64, tpu.core_type = #tpu.core_type<tc>, window_params = [{transform_indices = @transform_0, window_bounds = array<i64: 128, 16>}, {transform_indices = @transform_1, window_bounds = array<i64: 2, 128>}, {pipeline_mode = #tpu.pipeline_mode<synchronous>, transform_indices = @transform_2, window_bounds = array<i64: 32, 16>}, {pipeline_mode = #tpu.pipeline_mode<synchronous>, transform_indices = @transform_3, window_bounds = array<i64: 32, 1>}, {pipeline_mode = #tpu.pipeline_mode<synchronous>, transform_indices = @transform_4, window_bounds = array<i64: 16, 32>}, {pipeline_mode = #tpu.pipeline_mode<synchronous>, transform_indices = @transform_5, window_bounds = array<i64: 16, 1>}, {pipeline_mode = #tpu.pipeline_mode<synchronous>, transform_indices = @transform_6, window_bounds = array<i64: 8, 16>}, {pipeline_mode = #tpu.pipeline_mode<synchronous>, transform_indices = @transform_7, window_bounds = array<i64: 8, 1>}, {pipeline_mode = #tpu.pipeline_mode<synchronous>, transform_indices = @transform_8, window_bounds = array<i64: 4, 8>}, {pipeline_mode = #tpu.pipeline_mode<synchronous>, transform_indices = @transform_9, window_bounds = array<i64: 4, 2>}, {pipeline_mode = #tpu.pipeline_mode<synchronous>, transform_indices = @transform_10, window_bounds = array<i64: 4, 1>}, {transform_indices = @transform_11, window_bounds = array<i64: 4, 128>}]} {
    %c0 = arith.constant 0 : index
    %c0_0 = arith.constant 0 : index
    %0 = vector.load %arg1[%c0, %c0_0] : memref<128x16xf32, #tpu.memory_space<vmem>>, vector<128x16xf32>
    %c0_1 = arith.constant 0 : index
    %c0_2 = arith.constant 0 : index
    %1 = vector.load %arg2[%c0_1, %c0_2] : memref<2x128xf32, #tpu.memory_space<vmem>>, vector<2x128xf32>
    %c0_3 = arith.constant 0 : index
    %c0_4 = arith.constant 0 : index
    %2 = vector.load %arg3[%c0_3, %c0_4] : memref<32x16xf32, #tpu.memory_space<vmem>>, vector<32x16xf32>
    %cst = arith.constant dense<0.000000e+00> : vector<32x128xf32>
    %3 = tpu.matmul %2, %0, %cst {dimension_numbers = #tpu.dot_dimension_numbers<[1], [1], [0], [0], [0, 0, 1, 0], [], []>} : vector<32x16xf32>, vector<128x16xf32>, vector<32x128xf32> -> vector<32x128xf32>
    %c0_5 = arith.constant 0 : index
    %c0_6 = arith.constant 0 : index
    %4 = vector.load %arg4[%c0_5, %c0_6] : memref<32x1xf32, #tpu.memory_space<vmem>>, vector<32x1xf32>
    %5 = vector.broadcast %4 : vector<32x1xf32> to vector<32x128xf32>
    %6 = arith.addf %3, %5 : vector<32x128xf32>
    %cst_7 = arith.constant 0.000000e+00 : f32
    %7 = vector.broadcast %cst_7 : f32 to vector<32x128xf32>
    %8 = arith.maximumf %6, %7 : vector<32x128xf32>
    %c0_8 = arith.constant 0 : index
    %c0_9 = arith.constant 0 : index
    %9 = vector.load %arg5[%c0_8, %c0_9] : memref<16x32xf32, #tpu.memory_space<vmem>>, vector<16x32xf32>
    %cst_10 = arith.constant dense<0.000000e+00> : vector<16x128xf32>
    %10 = tpu.matmul %9, %8, %cst_10 {dimension_numbers = #tpu.dot_dimension_numbers<[1], [0], [0], [1], [0, 0, 1, 1], [], []>} : vector<16x32xf32>, vector<32x128xf32>, vector<16x128xf32> -> vector<16x128xf32>
    %c0_11 = arith.constant 0 : index
    %c0_12 = arith.constant 0 : index
    %11 = vector.load %arg6[%c0_11, %c0_12] : memref<16x1xf32, #tpu.memory_space<vmem>>, vector<16x1xf32>
    %12 = vector.broadcast %11 : vector<16x1xf32> to vector<16x128xf32>
    %13 = arith.addf %10, %12 : vector<16x128xf32>
    %cst_13 = arith.constant 0.000000e+00 : f32
    %14 = vector.broadcast %cst_13 : f32 to vector<16x128xf32>
    %15 = arith.maximumf %13, %14 : vector<16x128xf32>
    %c0_14 = arith.constant 0 : index
    %c0_15 = arith.constant 0 : index
    %16 = vector.load %arg7[%c0_14, %c0_15] : memref<8x16xf32, #tpu.memory_space<vmem>>, vector<8x16xf32>
    %cst_16 = arith.constant dense<0.000000e+00> : vector<8x128xf32>
    %17 = tpu.matmul %16, %15, %cst_16 {dimension_numbers = #tpu.dot_dimension_numbers<[1], [0], [0], [1], [0, 0, 1, 1], [], []>} : vector<8x16xf32>, vector<16x128xf32>, vector<8x128xf32> -> vector<8x128xf32>
    %c0_17 = arith.constant 0 : index
    %c0_18 = arith.constant 0 : index
    %18 = vector.load %arg8[%c0_17, %c0_18] : memref<8x1xf32, #tpu.memory_space<vmem>>, vector<8x1xf32>
    %19 = vector.broadcast %18 : vector<8x1xf32> to vector<8x128xf32>
    %20 = arith.addf %17, %19 : vector<8x128xf32>
    %cst_19 = arith.constant 0.000000e+00 : f32
    %21 = vector.broadcast %cst_19 : f32 to vector<8x128xf32>
    %22 = arith.maximumf %20, %21 : vector<8x128xf32>
    %c0_20 = arith.constant 0 : index
    %c0_21 = arith.constant 0 : index
    %23 = vector.load %arg10[%c0_20, %c0_21] : memref<4x2xf32, #tpu.memory_space<vmem>>, vector<4x2xf32>
    %c0_22 = arith.constant 0 : index
    %c0_23 = arith.constant 0 : index
    %24 = vector.load %arg9[%c0_22, %c0_23] : memref<4x8xf32, #tpu.memory_space<vmem>>, vector<4x8xf32>
    %cst_24 = arith.constant dense<0.000000e+00> : vector<4x128xf32>
    %25 = tpu.matmul %24, %22, %cst_24 {dimension_numbers = #tpu.dot_dimension_numbers<[1], [0], [0], [1], [0, 0, 1, 1], [], []>} : vector<4x8xf32>, vector<8x128xf32>, vector<4x128xf32> -> vector<4x128xf32>
    %26 = vector.extract_strided_slice %23 {offsets = [0, 0], sizes = [4, 1], strides = [1, 1]} : vector<4x2xf32> to vector<4x1xf32>
    %27 = vector.extract_strided_slice %1 {offsets = [0, 0], sizes = [1, 128], strides = [1, 1]} : vector<2x128xf32> to vector<1x128xf32>
    %28 = vector.broadcast %26 : vector<4x1xf32> to vector<4x128xf32>
    %29 = vector.broadcast %27 : vector<1x128xf32> to vector<4x128xf32>
    %30 = arith.mulf %28, %29 : vector<4x128xf32>
    %31 = arith.addf %25, %30 : vector<4x128xf32>
    %32 = vector.extract_strided_slice %23 {offsets = [0, 1], sizes = [4, 1], strides = [1, 1]} : vector<4x2xf32> to vector<4x1xf32>
    %33 = vector.extract_strided_slice %1 {offsets = [1, 0], sizes = [1, 128], strides = [1, 1]} : vector<2x128xf32> to vector<1x128xf32>
    %34 = vector.broadcast %32 : vector<4x1xf32> to vector<4x128xf32>
    %35 = vector.broadcast %33 : vector<1x128xf32> to vector<4x128xf32>
    %36 = arith.mulf %34, %35 : vector<4x128xf32>
    %37 = arith.addf %31, %36 : vector<4x128xf32>
    %c0_25 = arith.constant 0 : index
    %c0_26 = arith.constant 0 : index
    %38 = vector.load %arg11[%c0_25, %c0_26] : memref<4x1xf32, #tpu.memory_space<vmem>>, vector<4x1xf32>
    %39 = vector.broadcast %38 : vector<4x1xf32> to vector<4x128xf32>
    %40 = arith.addf %37, %39 : vector<4x128xf32>
    %cst_27 = arith.constant 0.000000e+00 : f32
    %41 = vector.broadcast %cst_27 : f32 to vector<4x128xf32>
    %42 = arith.maximumf %40, %41 : vector<4x128xf32>
    %c0_28 = arith.constant 0 : index
    %c0_29 = arith.constant 0 : index
    %43 = vector.load %arg12[%c0_28, %c0_29] : memref<4x128xf32, #tpu.memory_space<vmem>>, vector<4x128xf32>
    tpu.vector_store %arg12[%c0_28, %c0_29], %42 {strides = array<i32>} : memref<4x128xf32, #tpu.memory_space<vmem>>, vector<4x128xf32>,
    return
  }
  func.func @transform_0(%arg0: i32) -> (i32, i32) {
    %c0_i32 = arith.constant 0 : i32
    %c0_i32_0 = arith.constant 0 : i32
    return %arg0, %c0_i32 : i32, i32
  }
  func.func @transform_1(%arg0: i32) -> (i32, i32) {
    %c0_i32 = arith.constant 0 : i32
    %c0_i32_0 = arith.constant 0 : i32
    return %c0_i32, %arg0 : i32, i32
  }
  func.func @transform_2(%arg0: i32) -> (i32, i32) {
    %c0_i32 = arith.constant 0 : i32
    %c0_i32_0 = arith.constant 0 : i32
    %c0_i32_1 = arith.constant 0 : i32
    return %c0_i32, %c0_i32_0 : i32, i32
  }
  func.func @transform_3(%arg0: i32) -> (i32, i32) {
    %c0_i32 = arith.constant 0 : i32
    %c0_i32_0 = arith.constant 0 : i32
    %c0_i32_1 = arith.constant 0 : i32
    return %c0_i32, %c0_i32_0 : i32, i32
  }
  func.func @transform_4(%arg0: i32) -> (i32, i32) {
    %c0_i32 = arith.constant 0 : i32
    %c0_i32_0 = arith.constant 0 : i32
    %c0_i32_1 = arith.constant 0 : i32
    return %c0_i32, %c0_i32_0 : i32, i32
  }
  func.func @transform_5(%arg0: i32) -> (i32, i32) {
    %c0_i32 = arith.constant 0 : i32
    %c0_i32_0 = arith.constant 0 : i32
    %c0_i32_1 = arith.constant 0 : i32
    return %c0_i32, %c0_i32_0 : i32, i32
  }
  func.func @transform_6(%arg0: i32) -> (i32, i32) {
    %c0_i32 = arith.constant 0 : i32
    %c0_i32_0 = arith.constant 0 : i32
    %c0_i32_1 = arith.constant 0 : i32
    return %c0_i32, %c0_i32_0 : i32, i32
  }
  func.func @transform_7(%arg0: i32) -> (i32, i32) {
    %c0_i32 = arith.constant 0 : i32
    %c0_i32_0 = arith.constant 0 : i32
    %c0_i32_1 = arith.constant 0 : i32
    return %c0_i32, %c0_i32_0 : i32, i32
  }
  func.func @transform_8(%arg0: i32) -> (i32, i32) {
    %c0_i32 = arith.constant 0 : i32
    %c0_i32_0 = arith.constant 0 : i32
    %c0_i32_1 = arith.constant 0 : i32
    return %c0_i32, %c0_i32_0 : i32, i32
  }
  func.func @transform_9(%arg0: i32) -> (i32, i32) {
    %c0_i32 = arith.constant 0 : i32
    %c0_i32_0 = arith.constant 0 : i32
    %c0_i32_1 = arith.constant 0 : i32
    return %c0_i32, %c0_i32_0 : i32, i32
  }
  func.func @transform_10(%arg0: i32) -> (i32, i32) {
    %c0_i32 = arith.constant 0 : i32
    %c0_i32_0 = arith.constant 0 : i32
    %c0_i32_1 = arith.constant 0 : i32
    return %c0_i32, %c0_i32_0 : i32, i32
  }
  func.func @transform_11(%arg0: i32) -> (i32, i32) {
    %c0_i32 = arith.constant 0 : i32
    %c0_i32_0 = arith.constant 0 : i32
    return %c0_i32, %arg0 : i32, i32
  }
}

</mosaic_0001>

<bundles_post_ra>
// kernel: tpu_custom_call.1
= control target key start
LH: loop header
LB: loop body
LE: loop exit
PB: predicated region body
PF: predicated region fallthrough
CT: control target
= control target key end

     0   :  { %vm84_vm0 = vcmask 130048   ;;  %v741_v6 = vmov 0   ;;  %s975_s0 = inlined_call_operand.vmem [shape: f32[128,16], index: 0, kind: input, shape index: {}]   ;;  %s976_s1 = inlined_call_operand.vmem [shape: f32[2,128], index: 1, kind: input, shape index: {}]   ;;  %s977_s2 = inlined_call_operand.vmem [shape: f32[32,16], index: 2, kind: input, shape index: {}]   ;;  %s978_s3 = inlined_call_operand.vmem [shape: f32[32,1], index: 3, kind: input, shape index: {}]   ;;  %s979_s4 = inlined_call_operand.vmem [shape: f32[16,32], index: 4, kind: input, shape index: {}]   ;;  %s980_s5 = inlined_call_operand.vmem [shape: f32[16,1], index: 5, kind: input, shape index: {}]   ;;  %s981_s6 = inlined_call_operand.vmem [shape: f32[8,16], index: 6, kind: input, shape index: {}]   ;;  %s982_s7 = inlined_call_operand.vmem [shape: f32[8,1], index: 7, kind: input, shape index: {}]   ;;  %s983_s8 = inlined_call_operand.vmem [shape: f32[4,8], index: 8, kind: input, shape index: {}]   ;;  %s984_s9 = inlined_call_operand.vmem [shape: f32[4,2], index: 9, kind: input, shape index: {}]   ;;  %s985_s10 = inlined_call_operand.vmem [shape: f32[4,1], index: 10, kind: input, shape index: {}]   ;;  %s986_s11 = inlined_call_operand.hbm [shape: f32[4,128], index: 11, kind: output, shape index: {}]  }
   0x1   :  { %v39_v0 = vld [vmem:[%s975_s0] sm:$0xff]  ;;  %v40_v1 = vld [vmem:[%s975_s0 + $0x8] sm:$0xff]  ;;  %v41_v2 = vld [vmem:[%s975_s0 + $0x10] sm:$0xff]  ;;  %714 = vset.pattern.permute.xlu1 %v741_v6  ;;  %713 = vset.pattern.permute.xlu0 %v741_v6 }
   0x2   :  { %v648_v3 = vpack.c.bf16 %v40_v1, %v39_v0  ;;  %vm818_vm1 = vmpackc.low %vm84_vm0, %vm84_vm0  ;;  %v42_v5 = vld [vmem:[%s975_s0 + $0x18] sm:$0xff]  ;;  %v56_v8 = vld [vmem:[%s977_s2] sm:$0xff] }
   0x3   :  { %v654_v7 = vpack.c.bf16 %v42_v5, %v41_v2  ;;  %v43_v9 = vld [vmem:[%s975_s0 + $0x20] sm:$0xff]  ;;  %v44_v10 = vld [vmem:[%s975_s0 + $0x28] sm:$0xff]  ;;  %619 = vmatprep.mubr.msk.f32.mxu0 %vm84_vm0, %v56_v8  ;;  %v62_v11 = vld [vmem:[%s978_s3 + $0x10] sm:$0xff] }
   0x4   :  { %650 = vmatprep.subr.msk.bf16.mxu0 %vm818_vm1, %v648_v3  ;;  %v60_v12 = vld [vmem:[%s978_s3] sm:$0xff]  ;;  %76 = vperm.xlu1 %714, %v62_v11   ;;  %v660_v13 = vpack.c.bf16 %v44_v10, %v43_v9  ;;  %v63_v14 = vld [vmem:[%s978_s3 + $0x18] sm:$0xff]  ;;  %v61_v15 = vld [vmem:[%s978_s3 + $0x8] sm:$0xff] }
   0x5   :  { %653 = vmatpush3.bf16.xpose.msk.msra.mxu0 %vm818_vm1, %v648_v3  ;;  %66 = vperm.xlu0 %713, %v60_v12  }
   0x6   :  { %656 = vmatprep.subr.msk.bf16.mxu0 %vm818_vm1, %v654_v7 }
   0x7   :  { %16 = vsyncpa [#allocation3], 0  ;;  %v237_v16 = vld [vmem:[%s980_s5 + $0x8] sm:$0xff]  ;;  %v45_v17 = vld [vmem:[%s975_s0 + $0x30] sm:$0xff]  ;;  %vm248_vm2 = vcmask 261120   ;;  %v742_v59 = vmov 0.0|0.0  }
   0x8   :  { %81 = vperm.xlu1 %714, %v63_v14   ;;  %v46_v18 = vld [vmem:[%s975_s0 + $0x38] sm:$0xff]  ;;  %v236_v19 = vld [vmem:[%s980_s5] sm:$0xff]  ;;  %v48_v25 = vld [vmem:[%s975_s0 + $0x48] sm:$0xff]  ;;  %vm743_vm3 = vmmov 0   ;;  %v744_v60 = vmov 0.0   ;;  %v745_v8 = vmov 1  }
   0x9   :  { %71 = vperm.xlu0 %713, %v61_v15   ;;  %v666_v20 = vpack.c.bf16 %v46_v18, %v45_v17  ;;  %v874_v21 = vld [vmem:[%s984_s9] sm:$0xf]  ;;  %v49_v27 = vld [vmem:[%s975_s0 + $0x50] sm:$0xff]  ;;  %v50_v28 = vld [vmem:[%s975_s0 + $0x58] sm:$0xff]  ;;  %vm425_vm4 = vcmask 64512   ;;  %v420_v15 = vlaneseq }
   0xa   :  { %v333_v22 = vld [vmem:[%s982_s7] sm:$0xff]  ;;  %v678_v29 = vpack.c.bf16 %v50_v28, %v49_v27  ;;  %v52_v31 = vld [vmem:[%s975_s0 + $0x68] sm:$0xff]  ;;  %v53_v33 = vld [vmem:[%s975_s0 + $0x70] sm:$0xff] }
   0xb   :  { %v509_v23 = vld [vmem:[%s985_s10] sm:$0xf]  ;;  %v54_v34 = vld [vmem:[%s975_s0 + $0x78] sm:$0xff]  ;;  %v57_v36 = vld [vmem:[%s977_s2 + $0x8] sm:$0xff] }
   0xc   :  { %245 = vperm.xlu1 %714, %v237_v16   ;;  %v47_v24 = vld [vmem:[%s975_s0 + $0x40] sm:$0xff]  ;;  %v690_v35 = vpack.c.bf16 %v54_v34, %v53_v33  ;;  %v58_v37 = vld [vmem:[%s977_s2 + $0x10] sm:$0xff]  ;;  %v59_v38 = vld [vmem:[%s977_s2 + $0x18] sm:$0xff]  ;;  %v421_v16 = vshrl.u32 %v420_v15, 7 }
   0xd   :  { %659 = vmatpush3.bf16.xpose.msk.msra.mxu0 %vm818_vm1, %v654_v7  ;;  %240 = vperm.xlu0 %713, %v236_v19   ;;  %v672_v26 = vpack.c.bf16 %v48_v25, %v47_v24  ;;  %v51_v30 = vld [vmem:[%s975_s0 + $0x60] sm:$0xff]  ;;  %v235_v58 = vld [vmem:[%s979_s4 + $0x8] sm:$0xff] }
   0xe   :  { %662 = vmatprep.subr.msk.bf16.mxu0 %vm818_vm1, %v660_v13  ;;  %v684_v32 = vpack.c.bf16 %v52_v31, %v51_v30  ;;  %v234_v39 = vld [vmem:[%s979_s4] sm:$0xff]  ;;  %v422_v17 = vsub.s32 0, %v421_v16  ;;  %v505_v18 = vsub.s32 1, %v421_v16 }
   0xf   :  { %633 = vmatprep.mubr.msk.f32.mxu1 %vm248_vm2, %v234_v39  ;;  %v332_v7 = vld [vmem:[%s981_s6] sm:$0xff] }
  0x10   :  { %417 = vperm.xlu1 %714, %v874_v21   ;;  %v414_v14 = vld [vmem:[%s983_s8] sm:$0xf]  ;;  %s746_s8 = smov [#allocation2]  }
  0x11   :  { %336 = vperm.xlu0 %713, %v333_v22   ;;  %s524_s7 = sshll.u32 %s746_s8, 4  ;;  %s525_s7 = int_to_ptr.vmem [resolvable:$true] %s524_s7 }
  0x12   :  { %s717_s16 = scalar_lea.vmem %s525_s7, 64  ;;  %p722_p1 = scmp.lt.s32.totalorder %s525_s7, %s525_s7 }
  0x13   :  { %p718_p0 = scmp.ne.s32.totalorder %s525_s7, %s717_s16  ;;  %p723_p2 = scmp.lt.s32.totalorder %s717_s16, %s717_s16 }
  0x14   :  { %512 = vperm.xlu1 %714, %v509_v23  }
  0x15   :  { %665 = vmatpush3.bf16.xpose.msk.msra.mxu0 %vm818_vm1, %v660_v13  ;;  %715 = vset.pattern.permute.xlu0 %v745_v8  ;;  %p724_p3 = por %p723_p2, %p722_p1 }
  0x16   :  { %668 = vmatprep.subr.msk.bf16.mxu0 %vm818_vm1, %v666_v20  ;;  %500 = vperm.xlu0 %715, %v874_v21  }
  0x17   :  { %p725_p4 = pnand %p724_p3, %p718_p0 }
  0x1a   :  { %716 = vset.pattern.permute.xlu0 %v741_v6  ;;  %v55_v6 = vld [vmem:[%s976_s1] sm:$0x3] }
  0x1b   :  { %v423_v19 = vrot.slane %v55_v6, %v422_v17 }
  0x1d   :  { %671 = vmatpush3.bf16.xpose.msk.msra.mxu0 %vm818_vm1, %v666_v20  ;;  %v506_v20 = vrot.slane %v55_v6, %v505_v18 }
  0x1e   :  { %674 = vmatprep.subr.msk.bf16.mxu0 %vm818_vm1, %v672_v26 }
  0x25   :  { %677 = vmatpush3.bf16.xpose.msk.msra.mxu0 %vm818_vm1, %v672_v26 }
  0x26   :  { %680 = vmatprep.subr.msk.bf16.mxu0 %vm818_vm1, %v678_v29 }
  0x2d   :  { %683 = vmatpush3.bf16.xpose.msk.msra.mxu0 %vm818_vm1, %v678_v29 }
  0x2e   :  { %686 = vmatprep.subr.msk.bf16.mxu0 %vm818_vm1, %v684_v32 }
  0x35   :  { %689 = vmatpush3.bf16.xpose.msk.msra.mxu0 %vm818_vm1, %v684_v32 }
  0x36   :  { %692 = vmatprep.subr.msk.bf16.mxu0 %vm818_vm1, %v690_v35 }
  0x3d   :  { %695 = vmatpush3.bf16.xpose.msk.msra.mxu0 %vm818_vm1, %v690_v35 }
  0x44   :  { %620 = vmatmul.mubr.msk.f32.vlgmr.msra.gmra.mrb[0].mxu0 %vm84_vm0, %v57_v36 }
  0x45   :  { %622 = vmatprep.mubr.msk.f32.mxu0 %vm84_vm0, %v58_v37 }
  0x48   :  { %623 = vmatmul.mubr.msk.f32.gmra.mrb[2].mxu0 %vm84_vm0, %v59_v38 }
  0x83   :  { %v77_v41 = vpop.permute.xlu1 %76 }
  0x84   :  { %v67_v40 = vpop.permute.xlu0 %66 }
  0x87   :  { %v82_v48 = vpop.permute.xlu1 %81 }
  0x88   :  { %v72_v42 = vpop.permute.xlu0 %71 }
  0x8b   :  { %v246_v61 = vpop.permute.xlu1 %245 }
  0x8c   :  { %v241_v63 = vpop.permute.xlu0 %240 }
  0x8f   :  { %v418_v22 = vpop.permute.xlu1 %417 }
  0x90   :  { %v337_v9 = vpop.permute.xlu0 %336  ;;  %v424_v23 = vmul.f32 %v423_v19, %v418_v22 }
  0x93   :  { %v513_v29 = vpop.permute.xlu1 %512 }
  0x95   :  { %v501_v21 = vpop.permute.xlu0 %500 }
  0x96   :  { %v507_v24 = vmul.f32 %v506_v20, %v501_v21 }
 0x117   :  { %v621_v43 = vpop.f32.mrb[0].mxu0 }
 0x118   :  { %v217_v44 = vadd.f32 %v621_v43, %v72_v42  ;;  %v211_v45 = vpop.f32.mrb[1].mxu0 }
 0x119   :  { %v212_v46 = vadd.f32 %v211_v45, %v67_v40 }
 0x11a   :  { %v231_v47 = vmax.f32 %v217_v44, 0.0 }
 0x11b   :  { %v230_v49 = vmax.f32 %v212_v46, 0.0  ;;  %v624_v50 = vpop.f32.mrb[2].mxu0 }
 0x11c   :  { %v227_v51 = vadd.f32 %v624_v50, %v82_v48  ;;  %v221_v52 = vpop.f32.mrb[3].mxu0 }
 0x11d   :  { %v222_v53 = vadd.f32 %v221_v52, %v77_v41  ;;  %v696_v54 = vpack.c.bf16 %v231_v47, %v230_v49 }
 0x11e   :  { %v233_v55 = vmax.f32 %v227_v51, 0.0 }
 0x11f   :  { %v232_v56 = vmax.f32 %v222_v53, 0.0  ;;  %697 = vmatprep.subr.bf16.mxu1 %v696_v54 }
 0x120   :  { %699 = vmatpush3.bf16.msra.mxu1 %v696_v54 }
 0x121   :  { %v700_v57 = vpack.c.bf16 %v233_v55, %v232_v56 }
 0x123   :  { %701 = vmatprep.subr.bf16.mxu1 %v700_v57 }
 0x124   :  { %703 = vmatpush3.bf16.msra.mxu1 %v700_v57 }
 0x125   :  { %704 = vmatprep.subr.bf16.mxu1 %v742_v59 }
 0x127   :  { %634 = vmatmul.mubr.msk.f32.vlgmr.msra.gmra.mrb[0].mxu1 %vm248_vm2, %v235_v58 }
 0x128   :  { %640 = vmatprep.mubr.msk.f32.mxu1 %vm743_vm3, %v744_v60 }
 0x1fa   :  { %v635_v62 = vpop.f32.mrb[0].mxu1 }
 0x1fb   :  { %v327_v0 = vadd.f32 %v635_v62, %v246_v61  ;;  %v321_v1 = vpop.f32.mrb[1].mxu1 }
 0x1fc   :  { %v322_v2 = vadd.f32 %v321_v1, %v241_v63 }
 0x1fd   :  { %v331_v3 = vmax.f32 %v327_v0, 0.0 }
 0x1fe   :  { %v330_v4 = vmax.f32 %v322_v2, 0.0 }
 0x200   :  { %v705_v5 = vpack.c.bf16 %v331_v3, %v330_v4 }
 0x202   :  { %706 = vmatpush3.bf16.msra.mxu1 %v705_v5 }
 0x203   :  { %643 = vmatprep.subr.mxu1 %v744_v60 }
 0x205   :  { %641 = vmatmul.mubr.msk.f32.vlgmr.msra.gmra.mrb[2].mxu1 %vm84_vm0, %v332_v7 }
 0x206   :  { %645 = vmatprep.mubr.msk.f32.mxu1 %vm743_vm3, %v744_v60 }
 0x2d8   :  { %v408_v10 = vpop.f32.mrb[2].mxu1 }
 0x2d9   :  { %v409_v11 = vadd.f32 %v408_v10, %v337_v9  ;;  %v642_v12 = vpop.f32.mrb[3].mxu1 }
 0x2db   :  { %v412_v13 = vmax.f32 %v409_v11, 0.0 }
 0x2dd   :  { %644 = vmatpush3.msra.mxu1 %v412_v13 }
 0x2de   :  { %646 = vmatmul.mubr.msk.f32.vlgmr.msra.gmra.mrb[4].mxu1 %vm425_vm4, %v414_v14 }
 0x3b1   :  { %v495_v25 = vpop.f32.mrb[4].mxu1 }
 0x3b2   :  { %v496_v26 = vadd.f32 %v495_v25, %v424_v23  ;;  %v647_v27 = vpop.f32.mrb[5].mxu1 }
 0x3b4   :  { %v508_v28 = vadd.f32 %v507_v24, %v496_v26 }
 0x3b6   :  { %v515_v30 = vadd.f32 %v513_v29, %v508_v28 }
 0x3b8   :  { %v516_v31 = vmax.f32 %v515_v30, 0.0 }
 0x3ba   :  { %517 = vst [vmem:[#allocation2] sm:$0xf] %v516_v31 }
 0x3bb   :  { %728 = shalt.err (!%p725_p4)
}
 0x3bc   :  { %s729_s17 = scalar_lea.hbm %s986_s11, 64 }
 0x3bd   :  { %p730_p5 = scmp.ne.s32.totalorder %s986_s11, %s729_s17  ;;  %p733_p6 = scmp.lt.u32.totalorder %s729_s17, %s986_s11 }
 0x3bf   :  { %p735_p7 = pnand %p733_p6, %p730_p5 }
 0x3c1   :  { %738 = shalt.err (!%p735_p7)
}
 0x3c2   :  { %527 = dma.vmem_to_hbm [thread:$0]  %s525_s7, 64, %s986_s11, [#allocation3]  }
 0x3c3   :  { %739 = dma.done.wait [#allocation3], 64  }
 0x3c4   :  { %740 = vsyncadd [#allocation3], 4294967232 }
 0x3c5   :  { %531 = vsyncpa [#allocation3], 1 }

</bundles_post_ra>
